<compile_context>
chip_gen: v7x
topology: tpu7x:2x2x1
jax: 0.10.0
libtpu: 0.0.40
codegen_flags: <defaults>
</compile_context>

<pallas_src>
import functools

import jax
import jax.numpy as jnp
from jax.experimental import pallas as pl
from jax.experimental.pallas import tpu as pltpu

_LANE = 128
_SUBLANE = 8


def _round_up(n, m):
    return ((n + m - 1) // m) * m


def _divisors(n):
    ds = set()
    i = 1
    while i * i <= n:
        if n % i == 0:
            ds.add(i)
            ds.add(n // i)
        i += 1
    return sorted(ds)


def _vmem_capacity_bytes():
    """Physical per-core VMEM; conservative 64 MiB (v7x) fallback."""
    try:
        cap = int(getattr(pltpu.get_tpu_info(), "vmem_capacity_bytes", 0))
        if cap > 0:
            return cap
    except Exception:
        pass
    return 64 << 20


def _choose_tiles(B, S, D_pad, C_pad, x_elem, out_elem, vmem_cap):
    """Pick (TB, TS, vmem_limit_bytes) so the pipelined footprint really fits."""
    headroom = 4 << 20
    # dtype-aware sublane alignment for TS: 8 rows/vreg f32, 16 bf16, 32 int8.
    sub_align = max(_SUBLANE, 32 // max(1, x_elem))
    # Resident weight + bias (double-buffered by default).
    wb_bytes = 2 * D_pad * C_pad * 4 + 2 * _round_up(C_pad * 4, 1024)
    usable = max(vmem_cap - headroom - wb_bytes, 1 << 20)

    def var_footprint(tb, ts):
        x_b = 2 * tb * ts * D_pad * x_elem       # double-buffered input tile
        o_b = 2 * tb * C_pad * out_elem          # double-buffered output tile
        acc_b = tb * D_pad * 4                   # f32 accumulator scratch
        return x_b + o_b + acc_b

    def best_ts(tb):
        fixed = 2 * tb * C_pad * out_elem + tb * D_pad * 4
        per_row = 2 * tb * D_pad * x_elem
        cap = max(0, usable - fixed) // max(1, per_row)
        for align in (sub_align, _SUBLANE):
            cands = [d for d in _divisors(S) if d % align == 0 and d <= cap]
            if cands:
                return max(cands)
        # Nothing fits the budget: smallest legal tile; the vmem limit is
        # computed from the real footprint afterwards, so this still compiles
        # whenever it physically fits.
        legal = [d for d in _divisors(S) if d % _SUBLANE == 0]
        return min(legal) if legal else S

    # Batch-tile candidates keep the output BlockSpec legal: a multiple of 8
    # sublanes, or the whole batch.
    cands = sorted({d for d in _divisors(B) if d % _SUBLANE == 0} | {B})
    small = [t for t in cands if t <= 256]
    cands = small if small else cands

    best = None
    for tb in cands:
        ts = best_ts(tb)
        fp = var_footprint(tb, ts)
        fits = fp <= usable
        two_par = (B // tb) >= 2          # keep both v7x TensorCores busy
        score = (fits, two_par, tb * ts, -fp)
        if best is None or score > best[0]:
            best = (score, tb, ts)
    _, TB, TS = best

    vmem_bytes = int(min(vmem_cap, var_footprint(TB, TS) + wb_bytes + headroom))
    return TB, TS, vmem_bytes


def _single_step_kernel(inv_s, x_ref, w_ref, b_ref, o_ref):
    # Whole sequence in one tile: no accumulator round-trip.
    mean = jnp.sum(x_ref[...].astype(jnp.float32), axis=1) * inv_s
    out = jnp.dot(mean, w_ref[...], preferred_element_type=jnp.float32)
    o_ref[...] = (out + b_ref[...]).astype(o_ref.dtype)


def _multi_step_kernel(inv_s, x_ref, w_ref, b_ref, o_ref, acc_ref):
    s = pl.program_id(1)

    @pl.when(s == 0)
    def _init():
        acc_ref[...] = jnp.zeros_like(acc_ref)

    acc_ref[...] += jnp.sum(x_ref[...].astype(jnp.float32), axis=1)

    @pl.when(s == pl.num_programs(1) - 1)
    def _finalize():
        mean = acc_ref[...] * inv_s
        out = jnp.dot(mean, w_ref[...], preferred_element_type=jnp.float32)
        o_ref[...] = (out + b_ref[...]).astype(o_ref.dtype)


def classifier_forward(x, w_kn, b_row, num_classes):
    """x: (B, S, D); w_kn: (D_pad, C_pad) pre-transposed/padded f32 weight;
    b_row: (1, C_pad) f32 bias; returns (B, num_classes) in x.dtype."""
    B, S, D = x.shape
    D_pad, C_pad = w_kn.shape
    if D != D_pad:
        # One-off lane padding so the reduce / matmul-K run at full 128-lane
        # width (no-op for typical 128-multiple hidden dims).
        x = jnp.pad(x, ((0, 0), (0, 0), (0, D_pad - D)))

    x_elem = x.dtype.itemsize
    out_elem = x.dtype.itemsize
    vmem_cap = _vmem_capacity_bytes()
    TB, TS, vmem_bytes = _choose_tiles(B, S, D_pad, C_pad, x_elem, out_elem,
                                       vmem_cap)

    grid = (B // TB, S // TS)
    single_step = grid[1] == 1
    inv_s = float(1.0 / S)

    if single_step:
        kernel = functools.partial(_single_step_kernel, inv_s)
        scratch = []
    else:
        kernel = functools.partial(_multi_step_kernel, inv_s)
        scratch = [pltpu.VMEM((TB, D_pad), jnp.float32)]

    cost = pl.CostEstimate(
        flops=int(B * S * D_pad + 2 * B * D_pad * C_pad),
        transcendentals=0,
        bytes_accessed=int(B * S * D_pad * x_elem
                           + D_pad * C_pad * 4
                           + B * C_pad * out_elem),
    )

    out = pl.pallas_call(
        kernel,
        out_shape=jax.ShapeDtypeStruct((B, C_pad), x.dtype),
        grid=grid,
        in_specs=[
            pl.BlockSpec((TB, TS, D_pad), lambda b, s: (b, s, 0)),
            pl.BlockSpec((D_pad, C_pad), lambda b, s: (0, 0)),   # resident weight
            pl.BlockSpec((1, C_pad), lambda b, s: (0, 0)),       # resident bias
        ],
        out_specs=pl.BlockSpec((TB, C_pad), lambda b, s: (b, 0)),
        scratch_shapes=scratch,
        compiler_params=pltpu.CompilerParams(
            dimension_semantics=("parallel", "arbitrary"),
            vmem_limit_bytes=vmem_bytes),
        cost_estimate=cost,
    )(x, w_kn, b_row)

    return out[:, :num_classes]


class PallasClassifier:
    """Pallas port of the PyTorch Classifier: x.mean(dim=1) -> nn.Linear."""

    def __init__(self, weight, bias):
        # weight: (C, D) in PyTorch Linear layout; bias: (C,).
        C, D = weight.shape
        self.num_classes = C
        self.c_pad = _round_up(max(C, _LANE), _LANE)
        self.d_pad = _round_up(D, _LANE)
        # Pre-pad / pre-transpose ONCE (parameter-setup time, not per call):
        # (D_pad, C_pad) so the in-kernel dot is MXU-native (M,K)x(K,N).
        w = jnp.zeros((self.d_pad, self.c_pad), jnp.float32)
        self.w = w.at[:D, :C].set(weight.astype(jnp.float32).T)
        self.b = jnp.zeros((1, self.c_pad), jnp.float32).at[0, :C].set(
            bias.astype(jnp.float32))

    def __call__(self, x):
        return classifier_forward(x, self.w, self.b, self.num_classes)


if __name__ == "__main__":
    # Small shapes consistent with the module's forward:
    #   x: (batch=2, seq=8, input_dim=32); num_classes=9
    B, S, D, C = 2, 8, 32, 9

    key = jax.random.PRNGKey(0)
    kx, kw, kb = jax.random.split(key, 3)

    x = jax.random.normal(kx, (B, S, D), dtype=jnp.float32)
    bound = 1.0 / (D ** 0.5)
    weight = jax.random.uniform(kw, (C, D), minval=-bound, maxval=bound,
                                dtype=jnp.float32)
    bias = jax.random.uniform(kb, (C,), minval=-bound, maxval=bound,
                              dtype=jnp.float32)

    model = PallasClassifier(weight, bias)
    out = model(x)
    jax.block_until_ready(out)

    # Reference check in plain JAX (same semantics as the PyTorch module).
    ref = jnp.mean(x, axis=1) @ weight.T + bias
    assert out.shape == (B, C)
    assert jnp.allclose(out, ref, atol=1e-5, rtol=1e-5), float(
        jnp.max(jnp.abs(out - ref)))

    print("KERNEL_OK")
</pallas_src>

<mosaic_0001>
module attributes {stable_mosaic.version = 11 : i64} {
  func.func @_single_step_kernel(%arg0: i32, %arg1: i32, %arg2: memref<2x8x128xf32, #tpu.memory_space<vmem>>, %arg3: memref<128x128xf32, #tpu.memory_space<vmem>>, %arg4: memref<1x128xf32, #tpu.memory_space<vmem>>, %arg5: memref<2x128xf32, #tpu.memory_space<vmem>>) attributes {dimension_semantics = [#tpu.dimension_semantics<parallel>, #tpu.dimension_semantics<arbitrary>], iteration_bounds = array<i64: 1, 1>, scalar_prefetch = 0 : i64, scratch_operands = 0 : i64, tpu.core_type = #tpu.core_type<tc>, window_params = [{transform_indices = @transform_0, window_bounds = array<i64: 2, 8, 128>}, {pipeline_mode = #tpu.pipeline_mode<synchronous>, transform_indices = @transform_1, window_bounds = array<i64: 128, 128>}, {pipeline_mode = #tpu.pipeline_mode<synchronous>, transform_indices = @transform_2, window_bounds = array<i64: 1, 128>}, {transform_indices = @transform_3, window_bounds = array<i64: 2, 128>}]} {
    %c0 = arith.constant 0 : index
    %c0_0 = arith.constant 0 : index
    %c0_1 = arith.constant 0 : index
    %0 = vector.load %arg2[%c0, %c0_0, %c0_1] : memref<2x8x128xf32, #tpu.memory_space<vmem>>, vector<2x8x128xf32>
    %cst = arith.constant dense<0.000000e+00> : vector<2x128xf32>
    %1 = vector.multi_reduction <add>, %0, %cst [1] : vector<2x8x128xf32> to vector<2x128xf32>
    %cst_2 = arith.constant 1.250000e-01 : f32
    %2 = vector.broadcast %cst_2 : f32 to vector<2x128xf32>
    %3 = arith.mulf %1, %2 : vector<2x128xf32>
    %c0_3 = arith.constant 0 : index
    %c0_4 = arith.constant 0 : index
    %4 = vector.load %arg3[%c0_3, %c0_4] : memref<128x128xf32, #tpu.memory_space<vmem>>, vector<128x128xf32>
    %cst_5 = arith.constant dense<0.000000e+00> : vector<2x128xf32>
    %5 = tpu.matmul %3, %4, %cst_5 {dimension_numbers = #tpu.dot_dimension_numbers<[1], [0], [0], [1], [0, 0, 1, 1], [], []>} : vector<2x128xf32>, vector<128x128xf32>, vector<2x128xf32> -> vector<2x128xf32>
    %c0_6 = arith.constant 0 : index
    %c0_7 = arith.constant 0 : index
    %6 = vector.load %arg4[%c0_6, %c0_7] : memref<1x128xf32, #tpu.memory_space<vmem>>, vector<1x128xf32>
    %7 = vector.broadcast %6 : vector<1x128xf32> to vector<2x128xf32>
    %8 = arith.addf %5, %7 : vector<2x128xf32>
    %c0_8 = arith.constant 0 : index
    %c0_9 = arith.constant 0 : index
    %9 = vector.load %arg5[%c0_8, %c0_9] : memref<2x128xf32, #tpu.memory_space<vmem>>, vector<2x128xf32>
    tpu.vector_store %arg5[%c0_8, %c0_9], %8 {strides = array<i32>} : memref<2x128xf32, #tpu.memory_space<vmem>>, vector<2x128xf32>,
    return
  }
  func.func @transform_0(%arg0: i32, %arg1: i32) -> (i32, i32, i32) {
    %c0_i32 = arith.constant 0 : i32
    %c0_i32_0 = arith.constant 0 : i32
    return %arg0, %arg1, %c0_i32 : i32, i32, i32
  }
  func.func @transform_1(%arg0: i32, %arg1: i32) -> (i32, i32) {
    %c0_i32 = arith.constant 0 : i32
    %c0_i32_0 = arith.constant 0 : i32
    %c0_i32_1 = arith.constant 0 : i32
    return %c0_i32, %c0_i32_0 : i32, i32
  }
  func.func @transform_2(%arg0: i32, %arg1: i32) -> (i32, i32) {
    %c0_i32 = arith.constant 0 : i32
    %c0_i32_0 = arith.constant 0 : i32
    %c0_i32_1 = arith.constant 0 : i32
    return %c0_i32, %c0_i32_0 : i32, i32
  }
  func.func @transform_3(%arg0: i32, %arg1: i32) -> (i32, i32) {
    %c0_i32 = arith.constant 0 : i32
    %c0_i32_0 = arith.constant 0 : i32
    return %arg0, %c0_i32 : i32, i32
  }
}

</mosaic_0001>

<bundles_post_ra>
// kernel: tpu_custom_call.1
= control target key start
LH: loop header
LB: loop body
LE: loop exit
PB: predicated region body
PF: predicated region fallthrough
CT: control target
= control target key end

     0   :  { %8 = vsyncpa [#allocation3], 0  ;;  %s398_s0 = inlined_call_operand.hbm [shape: f32[2,8,128], index: 0, kind: input, shape index: {}]   ;;  %s399_s1 = inlined_call_operand.hbm [shape: f32[128,128], index: 1, kind: input, shape index: {}]   ;;  %s400_s2 = inlined_call_operand.vmem [shape: f32[1,128], index: 2, kind: input, shape index: {}]   ;;  %s401_s3 = inlined_call_operand.hbm [shape: f32[2,128], index: 3, kind: output, shape index: {}]  }
   0x1   :  { %9 = vsyncpa [#allocation6], 0 }
   0x2   :  { %10 = vsyncpa [#allocation4], 0  ;;  %s331_s12 = smov [#allocation2]   ;;  %s259_s16 = scalar_lea.hbm %s398_s0, 256 }
   0x3   :  { %s16_s13 = sshll.u32 %s331_s12, 4  ;;  %p260_p0 = scmp.ne.s32.totalorder %s398_s0, %s259_s16  ;;  %s17_s13 = int_to_ptr.vmem [resolvable:$true] %s16_s13 }
   0x4   :  { %p263_p1 = scmp.lt.u32.totalorder %s259_s16, %s398_s0 }
   0x6   :  { %p265_p2 = pnand %p263_p1, %p260_p0 }
   0x8   :  { %268 = shalt.err (!%p265_p2)
}
   0x9   :  { %s269_s21 = scalar_lea.vmem %s17_s13, 256  ;;  %p274_p4 = scmp.lt.s32.totalorder %s17_s13, %s17_s13 }
   0xa   :  { %p270_p3 = scmp.ne.s32.totalorder %s17_s13, %s269_s21  ;;  %p275_p5 = scmp.lt.s32.totalorder %s269_s21, %s269_s21 }
   0xc   :  { %p276_p6 = por %p275_p5, %p274_p4 }
   0xe   :  { %p277_p7 = pnand %p276_p6, %p270_p3 }
  0x10   :  { %280 = shalt.err (!%p277_p7)
}
  0x11   :  { %s332_s22 = smov 128   ;;  %s333_s23 = smov 8  }
  0x12   :  { %22 = dma.hbm_to_vmem [thread:$0]  %s398_s0, 256, %s17_s13, [#allocation3], %s332_s22, %s332_s22, %s333_s23  }
  0x13   :  { %s334_s26 = smov [#allocation5]   ;;  %s281_s30 = scalar_lea.hbm %s399_s1, 2048 }
  0x14   :  { %s28_s27 = sshll.u32 %s334_s26, 4  ;;  %p282_p8 = scmp.ne.s32.totalorder %s399_s1, %s281_s30  ;;  %s29_s27 = int_to_ptr.vmem [resolvable:$true] %s28_s27 }
  0x15   :  { %p285_p9 = scmp.lt.u32.totalorder %s281_s30, %s399_s1 }
  0x17   :  { %p287_p10 = pnand %p285_p9, %p282_p8 }
  0x19   :  { %290 = shalt.err (!%p287_p10)
}
  0x1a   :  { %s291_s8 = scalar_lea.vmem %s29_s27, 2048  ;;  %p296_p12 = scmp.lt.s32.totalorder %s29_s27, %s29_s27 }
  0x1b   :  { %p292_p11 = scmp.ne.s32.totalorder %s29_s27, %s291_s8  ;;  %p297_p13 = scmp.lt.s32.totalorder %s291_s8, %s291_s8 }
  0x1d   :  { %p298_p0 = por %p297_p13, %p296_p12 }
  0x1f   :  { %p299_p1 = pnand %p298_p0, %p292_p11 }
  0x21   :  { %302 = shalt.err (!%p299_p1)
}
  0x22   :  { %34 = dma.hbm_to_vmem [thread:$0]  %s399_s1, 2048, %s29_s27, [#allocation6], %s332_s22, %s332_s22, %s333_s23  }
  0x23   :  { %325 = dma.done.wait [#allocation3], 256  }
  0x24   :  { %326 = vsyncadd [#allocation3], 4294967040 }
  0x25   :  { %327 = dma.done.wait [#allocation6], 2048  }
  0x26   :  { %328 = vsyncadd [#allocation6], 4294965248  ;;  %v335_v0 = vmov 0.0|0.0   ;;  %vm336_vm0 = vmmov 0   ;;  %v337_v1 = vmov 0.0   ;;  %v59_v2 = vld [vmem:[#allocation5] sm:$0xff] }
  0x27   :  { %227 = vmatprep.subr.bf16.mxu0 %v335_v0  ;;  %224 = vmatprep.mubr.msk.f32.mxu0 %vm336_vm0, %v337_v1  ;;  %v60_v3 = vld [vmem:[#allocation5 + $0x8] sm:$0xff]  ;;  %v61_v4 = vld [vmem:[#allocation5 + $0x10] sm:$0xff]  ;;  %v62_v6 = vld [vmem:[#allocation5 + $0x18] sm:$0xff]  ;;  %vm84_vm1 = vcmask 1041409   ;;  %s338_s11 = smov [#allocation7]  }
  0x28   :  { %v228_v5 = vpack.c.bf16 %v60_v3, %v59_v2  ;;  %v231_v7 = vpack.c.bf16 %v62_v6, %v61_v4  ;;  %v63_v8 = vld [vmem:[#allocation5 + $0x20] sm:$0xff]  ;;  %v64_v9 = vld [vmem:[#allocation5 + $0x28] sm:$0xff]  ;;  %v43_v10 = vld [vmem:[#allocation2] sm:$0xff]  ;;  %s164_s12 = sshll.u32 %s338_s11, 4  ;;  %s165_s12 = int_to_ptr.vmem [resolvable:$true] %s164_s12 }
  0x29   :  { %v44_v11 = vld [vmem:[#allocation2 + $0x8] sm:$0xff]  ;;  %v45_v12 = vrot.slane %v43_v10, 4  ;;  %v234_v14 = vpack.c.bf16 %v64_v9, %v63_v8  ;;  %v65_v15 = vld [vmem:[#allocation5 + $0x30] sm:$0xff]  ;;  %v67_v22 = vld [vmem:[#allocation5 + $0x40] sm:$0xff]  ;;  %s303_s13 = scalar_lea.vmem %s165_s12, 32  ;;  %p308_p3 = scmp.lt.s32.totalorder %s165_s12, %s165_s12 }
  0x2a   :  { %229 = vmatpush3.bf16.msra.mxu0 %v228_v5  ;;  %v51_v13 = vrot.slane %v44_v11, 4  ;;  %v66_v16 = vld [vmem:[#allocation5 + $0x38] sm:$0xff]  ;;  %v68_v23 = vld [vmem:[#allocation5 + $0x48] sm:$0xff]  ;;  %v69_v27 = vld [vmem:[#allocation5 + $0x50] sm:$0xff]  ;;  %p304_p2 = scmp.ne.s32.totalorder %s165_s12, %s303_s13  ;;  %p309_p4 = scmp.lt.s32.totalorder %s303_s13, %s303_s13 }
  0x2b   :  { %230 = vmatprep.subr.bf16.mxu0 %v335_v0  ;;  %v46_v17 = vadd.f32 %v45_v12, %v43_v10  ;;  %v237_v19 = vpack.c.bf16 %v66_v16, %v65_v15  ;;  %v240_v24 = vpack.c.bf16 %v68_v23, %v67_v22  ;;  %v70_v28 = vld [vmem:[#allocation5 + $0x58] sm:$0xff]  ;;  %v71_v32 = vld [vmem:[#allocation5 + $0x60] sm:$0xff]  ;;  %v72_v33 = vld [vmem:[#allocation5 + $0x68] sm:$0xff] }
  0x2c   :  { %v52_v18 = vadd.f32 %v51_v13, %v44_v11  ;;  %v243_v29 = vpack.c.bf16 %v70_v28, %v69_v27  ;;  %v246_v34 = vpack.c.bf16 %v72_v33, %v71_v32  ;;  %v73_v37 = vld [vmem:[#allocation5 + $0x70] sm:$0xff]  ;;  %v74_v38 = vld [vmem:[#allocation5 + $0x78] sm:$0xff]  ;;  %p310_p5 = por %p309_p4, %p308_p3 }
  0x2d   :  { %v47_v20 = vrot.slane %v46_v17, 2  ;;  %v249_v39 = vpack.c.bf16 %v74_v38, %v73_v37  ;;  %v174_v43 = vld [vmem:[%s400_s2] ss:$0 sm:$0xff] }
  0x2e   :  { %232 = vmatpush3.bf16.msra.mxu0 %v231_v7  ;;  %v53_v21 = vrot.slane %v52_v18, 2  ;;  %p311_p6 = pnand %p310_p5, %p304_p2 }
  0x2f   :  { %233 = vmatprep.subr.bf16.mxu0 %v335_v0  ;;  %v48_v25 = vadd.f32 %v47_v20, %v46_v17 }
  0x30   :  { %v54_v26 = vadd.f32 %v53_v21, %v52_v18 }
  0x31   :  { %v49_v30 = vrot.slane %v48_v25, 1 }
  0x32   :  { %235 = vmatpush3.bf16.msra.mxu0 %v234_v14  ;;  %v55_v31 = vrot.slane %v54_v26, 1 }
  0x33   :  { %236 = vmatprep.subr.bf16.mxu0 %v335_v0  ;;  %v50_v35 = vadd.f32 %v49_v30, %v48_v25 }
  0x34   :  { %v56_v36 = vadd.f32 %v55_v31, %v54_v26 }
  0x35   :  { %v57_v40 = vmul.f32 0.125, %v50_v35 }
  0x36   :  { %238 = vmatpush3.bf16.msra.mxu0 %v237_v19  ;;  %v58_v41 = vmul.f32 0.125, %v56_v36 }
  0x37   :  { %239 = vmatprep.subr.bf16.mxu0 %v335_v0 }
  0x38   :  { %v85_v42 = vsel %vm84_vm1, %v58_v41, %v57_v40 }
  0x3a   :  { %241 = vmatpush3.bf16.msra.mxu0 %v240_v24 }
  0x3b   :  { %242 = vmatprep.subr.bf16.mxu0 %v335_v0 }
  0x3e   :  { %244 = vmatpush3.bf16.msra.mxu0 %v243_v29 }
  0x3f   :  { %245 = vmatprep.subr.bf16.mxu0 %v335_v0 }
  0x42   :  { %247 = vmatpush3.bf16.msra.mxu0 %v246_v34 }
  0x43   :  { %248 = vmatprep.subr.bf16.mxu0 %v335_v0 }
  0x46   :  { %250 = vmatpush3.bf16.msra.mxu0 %v249_v39 }
  0x49   :  { %225 = vmatmul.mubr.f32.vlgmr.msra.gmra.mrb[0].mxu0 %v85_v42 }
 0x11c   :  { %v153_v44 = vpop.f32.mrb[0].mxu0 }
 0x11d   :  { %v154_v45 = vadd.f32 %v174_v43, %v153_v44  ;;  %v226_v46 = vpop.f32.mrb[1].mxu0 }
 0x11f   :  { %157 = vst [vmem:[#allocation7] sm:$0x3] %v154_v45 }
 0x120   :  { %314 = shalt.err (!%p311_p6)
}
 0x121   :  { %s315_s16 = scalar_lea.hbm %s401_s3, 32 }
 0x122   :  { %p316_p7 = scmp.ne.s32.totalorder %s401_s3, %s315_s16  ;;  %p319_p8 = scmp.lt.u32.totalorder %s315_s16, %s401_s3 }
 0x124   :  { %p321_p9 = pnand %p319_p8, %p316_p7 }
 0x126   :  { %324 = shalt.err (!%p321_p9)
}
 0x127   :  { %167 = dma.vmem_to_hbm [thread:$0]  %s165_s12, 32, %s401_s3, [#allocation4]  }
 0x128   :  { %329 = dma.done.wait [#allocation4], 32  }
 0x129   :  { %330 = vsyncadd [#allocation4], 4294967264 }
 0x12a   :  { %171 = vsyncpa [#allocation3], 1 }
 0x12b   :  { %172 = vsyncpa [#allocation6], 1 }
 0x12c   :  { %173 = vsyncpa [#allocation4], 1 }

</bundles_post_ra>
